<compile_context>
chip_gen: v5e
topology: v5e:2x2
jax: 0.10.0
libtpu: 0.0.40
codegen_flags: <defaults>
</compile_context>

<pallas_src>
import functools

import jax
import jax.numpy as jnp
from jax.experimental import pallas as pl
from jax.experimental.pallas import tpu as pltpu

_NEG_INF = -1e30  # finite "never wins" bias for padded expert lanes


def _router_kernel(hs_ref, w_ref, b_ref, tril_ref,
                   idx_ref, prob_ref, logit_ref,
                   count_ref, *, expert_capacity, n_experts):
    s_idx = pl.program_id(1)
    seq_tile = tril_ref.shape[0]

    # First seq chunk of each batch row: reset the per-expert running count.
    @pl.when(s_idx == 0)
    def _():
        count_ref[...] = jnp.zeros_like(count_ref)

    # classifier (nn.Linear): native-dtype operands, f32 accumulation (MXU).
    logits = jnp.dot(hs_ref[0], w_ref[...],
                     preferred_element_type=jnp.float32) + b_ref[...]   # [Ts, Ep]

    # Softmax stats in f32. Softmax is monotone, so argmax(logits)==argmax(probs)
    # and max(probs) == 1 / sum(exp(logits - max)). No full probs tensor needed.
    m = jnp.max(logits, axis=-1, keepdims=True)                          # [Ts, 1]
    denom = jnp.sum(jnp.exp(logits - m), axis=-1, keepdims=True)         # [Ts, 1]
    pmax = pl.reciprocal(denom, approx=False)                            # [Ts, 1]

    # Top-1 expert (first index on ties, matching torch.argmax).
    # TODO(synk): an all-NaN row selects no expert here (torch.argmax would
    # still return an index); only matters for pathological inputs.
    lane = jax.lax.broadcasted_iota(jnp.int32, logits.shape, 1)          # [Ts, Ep]
    is_max = logits >= m
    first_idx = jnp.min(jnp.where(is_max, lane, logits.shape[-1]),
                        axis=-1, keepdims=True)
    one_hot = lane == first_idx                                          # bool

    # Chunked inclusive cumsum along the sequence: intra-chunk tril matmul on
    # the MXU (exact: 0/1 bf16 operands, f32 accumulation, counts << 2^24) plus
    # the carried per-expert running count from earlier chunks of this row.
    local = jnp.dot(tril_ref[...], one_hot.astype(jnp.bfloat16),
                    preferred_element_type=jnp.float32)                  # [Ts, Ep]
    carry = count_ref[...]                                               # [1, Ep]
    token_priority = local + carry
    count_ref[...] = carry + local[seq_tile - 1:seq_tile, :]             # chunk totals

    # Capacity mask — HF semantics: inclusive cumsum <= expert_capacity.
    keep = one_hot & (token_priority <= float(expert_capacity))

    # Store only the real expert columns; the 128-lane padding stays in VMEM.
    idx_ref[0] = keep[:, :n_experts].astype(idx_ref.dtype)
    prob_ref[0] = pmax
    logit_ref[0] = logits[:, :n_experts]


def _vmem_budget_bytes():
    """Generation-aware scoped-VMEM limit: ~96 MiB on 128 MiB parts, ~48 MiB on v7x."""
    try:
        cap = int(pltpu.get_tpu_info().vmem_capacity_bytes)
    except Exception:
        cap = 64 * 1024 * 1024  # conservative fallback (fits every generation)
    return min(cap * 3 // 4, cap - 8 * 1024 * 1024)


def _pick_seq_tile(S, H, E, E_pad, hs_bytes, w_bytes, vmem_limit):
    """Largest multiple-of-8 seq tile whose working set fits the VMEM budget."""
    budget = int(vmem_limit * 0.85)                       # headroom for compiler temps
    fixed = 2 * H * E_pad * w_bytes + 2 * E_pad * 4       # weight + bias (<=2 bufs)

    def tile_bytes(ts):
        hs = 2 * ts * H * hs_bytes                        # double-buffered input
        out = 2 * ts * (E * (1 + 4) + 4)                  # idx(i8) + logits(f32) + prob
        tril = 2 * ts * ts * 2                            # bf16 cumsum operator
        live = 6 * ts * E_pad * 4                         # in-flight f32 temporaries
        return hs + out + tril + live + E_pad * 4

    ts = 8
    for cand in (1024, 768, 512, 384, 256, 192, 128, 96, 64, 32, 16, 8):
        if fixed + tile_bytes(cand) <= budget:
            ts = cand
            break
    if S <= ts:
        return S        # whole sequence in one block (block == full dim is legal)
    return ts           # multiple of 8; tail chunk handled by cdiv grid + OOB masking


def switch_top1_router(hidden_states, weight, bias, *, expert_capacity):
    """hidden_states: [B, S, H], weight: [H, E], bias: [E]."""
    B, S, H = hidden_states.shape
    E = weight.shape[1]

    # Run the classifier matmul in the activations' dtype (bf16 hs -> bf16
    # weight -> single-pass MXU, half the weight DMA/VMEM). Accumulation is f32.
    weight = weight.astype(hidden_states.dtype)

    # Pad the expert dim to a full 128-lane width *for the in-VMEM compute only*
    # (lane-dense layout + full MXU N). Padded experts get a huge negative bias
    # so they never win argmax and add ~0 to the softmax denominator. Outputs
    # are emitted unpadded.
    E_pad = max(128, -(-E // 128) * 128)
    if E_pad != E:
        weight = jnp.pad(weight, ((0, 0), (0, E_pad - E)))
        bias = jnp.pad(bias, (0, E_pad - E), constant_values=_NEG_INF)
    bias2d = bias.reshape(1, E_pad).astype(jnp.float32)

    vmem_limit = _vmem_budget_bytes()
    Ts = _pick_seq_tile(S, H, E, E_pad, hidden_states.dtype.itemsize,
                        weight.dtype.itemsize, vmem_limit)
    n_seq = pl.cdiv(S, Ts)

    # Constant lower-triangular cumsum operator, built once on the host.
    # Constant index_map -> DMA'd once; no per-batch-row VPU rebuild in-kernel.
    tril = jnp.tril(jnp.ones((Ts, Ts), dtype=jnp.bfloat16))

    kernel = functools.partial(_router_kernel,
                               expert_capacity=expert_capacity, n_experts=E)

    out_shapes = (
        jax.ShapeDtypeStruct((B, S, E), jnp.int8),      # one-hot expert mask
        jax.ShapeDtypeStruct((B, S, 1), jnp.float32),   # router prob (max)
        jax.ShapeDtypeStruct((B, S, E), jnp.float32),   # router logits
    )

    def run(single_buffer_consts):
        if single_buffer_consts:
            def const_spec(shape, imap):
                return pl.BlockSpec(shape, imap, pipeline_mode=pl.Buffered(1))
        else:
            const_spec = pl.BlockSpec
        return pl.pallas_call(
            kernel,
            out_shape=out_shapes,
            grid_spec=pltpu.PrefetchScalarGridSpec(
                num_scalar_prefetch=0,
                grid=(B, n_seq),
                in_specs=[
                    pl.BlockSpec((1, Ts, H), lambda b, s: (b, s, 0)),
                    const_spec((H, E_pad), lambda b, s: (0, 0)),
                    const_spec((1, E_pad), lambda b, s: (0, 0)),
                    const_spec((Ts, Ts), lambda b, s: (0, 0)),
                ],
                out_specs=[
                    pl.BlockSpec((1, Ts, E), lambda b, s: (b, s, 0)),
                    pl.BlockSpec((1, Ts, 1), lambda b, s: (b, s, 0)),
                    pl.BlockSpec((1, Ts, E), lambda b, s: (b, s, 0)),
                ],
                scratch_shapes=[
                    pltpu.VMEM((1, E_pad), jnp.float32),  # running per-expert count
                ],
            ),
            compiler_params=pltpu.CompilerParams(
                dimension_semantics=("parallel", "arbitrary"),
                vmem_limit_bytes=vmem_limit,
            ),
        )(hidden_states, weight, bias2d, tril)

    try:
        # Single-buffer the constant operands (weight / bias / tril): frees the
        # dead second DMA buffer's VMEM (matters at large H on v7x's 64 MiB).
        return run(True)
    except Exception:
        # Fallback if this runtime rejects Buffered(1) on the main pipeline.
        return run(False)


def _reference(hidden_states, weight, bias, expert_capacity):
    logits = jnp.einsum("bsh,he->bse", hidden_states, weight) + bias
    probs = jax.nn.softmax(logits.astype(jnp.float32), axis=-1)
    idx = jnp.argmax(probs, axis=-1)
    one_hot = jax.nn.one_hot(idx, probs.shape[-1], dtype=jnp.int32)
    priority = jnp.cumsum(one_hot, axis=-2)
    one_hot = one_hot * (priority <= expert_capacity)
    return one_hot, jnp.max(probs, axis=-1, keepdims=True), logits


if __name__ == "__main__":
    B, S, H, E = 2, 8, 32, 8
    expert_capacity = 4

    key = jax.random.PRNGKey(0)
    k_hs, k_w, k_b = jax.random.split(key, 3)
    hidden_states = jax.random.normal(k_hs, (B, S, H), dtype=jnp.float32)
    weight = jax.random.normal(k_w, (H, E), dtype=jnp.float32) * 0.05
    bias = jax.random.normal(k_b, (E,), dtype=jnp.float32) * 0.01

    expert_index, router_probs, router_logits = switch_top1_router(
        hidden_states, weight, bias, expert_capacity=expert_capacity)
    jax.block_until_ready((expert_index, router_probs, router_logits))

    ref_idx, ref_probs, ref_logits = _reference(
        hidden_states, weight, bias, expert_capacity)
    assert jnp.array_equal(expert_index.astype(jnp.int32), ref_idx), "expert_index mismatch"
    assert jnp.allclose(router_probs, ref_probs, atol=1e-5), "router_probs mismatch"
    assert jnp.allclose(router_logits, ref_logits, atol=1e-4), "router_logits mismatch"

    print("KERNEL_OK")
</pallas_src>

<mosaic_0001>
module attributes {stable_mosaic.version = 11 : i64} {
  func.func @_router_kernel(%arg0: i32, %arg1: i32, %arg2: memref<1x8x32xf32, #tpu.memory_space<vmem>>, %arg3: memref<32x128xf32, #tpu.memory_space<vmem>>, %arg4: memref<1x128xf32, #tpu.memory_space<vmem>>, %arg5: memref<8x8xbf16, #tpu.memory_space<vmem>>, %arg6: memref<1x8x8xi8, #tpu.memory_space<vmem>>, %arg7: memref<1x8x1xf32, #tpu.memory_space<vmem>>, %arg8: memref<1x8x8xf32, #tpu.memory_space<vmem>>, %arg9: memref<1x128xf32, #tpu.memory_space<vmem>>) attributes {dimension_semantics = [#tpu.dimension_semantics<parallel>, #tpu.dimension_semantics<arbitrary>], iteration_bounds = array<i64: 2, 1>, scalar_prefetch = 0 : i64, scratch_operands = 1 : i64, tpu.core_type = #tpu.core_type<tc>, window_params = [{transform_indices = @transform_0, window_bounds = array<i64: 1, 8, 32>}, {pipeline_mode = #tpu.pipeline_mode<synchronous>, transform_indices = @transform_1, window_bounds = array<i64: 32, 128>}, {pipeline_mode = #tpu.pipeline_mode<synchronous>, transform_indices = @transform_2, window_bounds = array<i64: 1, 128>}, {pipeline_mode = #tpu.pipeline_mode<synchronous>, transform_indices = @transform_3, window_bounds = array<i64: 8, 8>}, {transform_indices = @transform_4, window_bounds = array<i64: 1, 8, 8>}, {transform_indices = @transform_5, window_bounds = array<i64: 1, 8, 1>}, {transform_indices = @transform_6, window_bounds = array<i64: 1, 8, 8>}]} {
    %c0_i32 = arith.constant 0 : i32
    %0 = arith.cmpi eq, %arg1, %c0_i32 : i32
    %1 = arith.extui %0 : i1 to i32
    %c0_i32_0 = arith.constant 0 : i32
    %2 = arith.cmpi ne, %1, %c0_i32_0 : i32
    scf.if %2 {
      %cst_27 = arith.constant 0.000000e+00 : f32
      %53 = vector.broadcast %cst_27 : f32 to vector<1x128xf32>
      %c0_28 = arith.constant 0 : index
      %c0_29 = arith.constant 0 : index
      %54 = vector.load %arg9[%c0_28, %c0_29] : memref<1x128xf32, #tpu.memory_space<vmem>>, vector<1x128xf32>
      tpu.vector_store %arg9[%c0_28, %c0_29], %53 {strides = array<i32>} : memref<1x128xf32, #tpu.memory_space<vmem>>, vector<1x128xf32>,
    } else {
    }
    %c0 = arith.constant 0 : index
    %c0_1 = arith.constant 0 : index
    %c0_2 = arith.constant 0 : index
    %3 = vector.load %arg2[%c0, %c0_1, %c0_2] : memref<1x8x32xf32, #tpu.memory_space<vmem>>, vector<1x8x32xf32>
    %4 = vector.shape_cast %3 : vector<1x8x32xf32> to vector<8x32xf32>
    %c0_3 = arith.constant 0 : index
    %c0_4 = arith.constant 0 : index
    %5 = vector.load %arg3[%c0_3, %c0_4] : memref<32x128xf32, #tpu.memory_space<vmem>>, vector<32x128xf32>
    %cst = arith.constant dense<0.000000e+00> : vector<8x128xf32>
    %6 = tpu.matmul %4, %5, %cst {dimension_numbers = #tpu.dot_dimension_numbers<[1], [0], [0], [1], [0, 0, 1, 1], [], []>} : vector<8x32xf32>, vector<32x128xf32>, vector<8x128xf32> -> vector<8x128xf32>
    %c0_5 = arith.constant 0 : index
    %c0_6 = arith.constant 0 : index
    %7 = vector.load %arg4[%c0_5, %c0_6] : memref<1x128xf32, #tpu.memory_space<vmem>>, vector<1x128xf32>
    %8 = vector.broadcast %7 : vector<1x128xf32> to vector<8x128xf32>
    %9 = arith.addf %6, %8 : vector<8x128xf32>
    %cst_7 = arith.constant dense<0xFF800000> : vector<8xf32>
    %10 = vector.multi_reduction <maximumf>, %9, %cst_7 [1] : vector<8x128xf32> to vector<8xf32>
    %11 = vector.shape_cast %10 : vector<8xf32> to vector<8x1xf32>
    %12 = vector.broadcast %11 : vector<8x1xf32> to vector<8x128xf32>
    %13 = arith.subf %9, %12 : vector<8x128xf32>
    %14 = math.exp %13 : vector<8x128xf32>
    %cst_8 = arith.constant dense<0.000000e+00> : vector<8xf32>
    %15 = vector.multi_reduction <add>, %14, %cst_8 [1] : vector<8x128xf32> to vector<8xf32>
    %16 = vector.shape_cast %15 : vector<8xf32> to vector<8x1xf32>
    %17 = tpu.reciprocal %16 : vector<8x1xf32> -> vector<8x1xf32>
    %18 = tpu.iota {dimensions = array<i32: 1>} : vector<8x128xi32>
    %19 = vector.broadcast %11 : vector<8x1xf32> to vector<8x128xf32>
    %20 = arith.cmpf oge, %9, %19 : vector<8x128xf32>
    %c128_i32 = arith.constant 128 : i32
    %21 = vector.broadcast %c128_i32 : i32 to vector<8x128xi32>
    %22 = arith.select %20, %18, %21 : vector<8x128xi1>, vector<8x128xi32>
    %cst_9 = arith.constant dense<2147483647> : vector<8xi32>
    %23 = vector.multi_reduction <minsi>, %22, %cst_9 [1] : vector<8x128xi32> to vector<8xi32>
    %24 = vector.shape_cast %23 : vector<8xi32> to vector<8x1xi32>
    %25 = vector.broadcast %24 : vector<8x1xi32> to vector<8x128xi32>
    %26 = arith.cmpi eq, %18, %25 : vector<8x128xi32>
    %c0_10 = arith.constant 0 : index
    %c0_11 = arith.constant 0 : index
    %27 = vector.load %arg5[%c0_10, %c0_11] : memref<8x8xbf16, #tpu.memory_space<vmem>>, vector<8x8xbf16>
    %28 = arith.extui %26 : vector<8x128xi1> to vector<8x128xi32>
    %29 = arith.sitofp %28 : vector<8x128xi32> to vector<8x128xf32>
    %30 = arith.truncf %29 : vector<8x128xf32> to vector<8x128xbf16>
    %cst_12 = arith.constant dense<0.000000e+00> : vector<8x128xf32>
    %31 = tpu.matmul %27, %30, %cst_12 {dimension_numbers = #tpu.dot_dimension_numbers<[1], [0], [0], [1], [0, 0, 1, 1], [], []>} : vector<8x8xbf16>, vector<8x128xbf16>, vector<8x128xf32> -> vector<8x128xf32>
    %c0_13 = arith.constant 0 : index
    %c0_14 = arith.constant 0 : index
    %32 = vector.load %arg9[%c0_13, %c0_14] : memref<1x128xf32, #tpu.memory_space<vmem>>, vector<1x128xf32>
    %33 = vector.broadcast %32 : vector<1x128xf32> to vector<8x128xf32>
    %34 = arith.addf %31, %33 : vector<8x128xf32>
    %35 = vector.extract_strided_slice %31 {offsets = [7, 0], sizes = [1, 128], strides = [1, 1]} : vector<8x128xf32> to vector<1x128xf32>
    %36 = arith.addf %32, %35 : vector<1x128xf32>
    %c0_15 = arith.constant 0 : index
    %c0_16 = arith.constant 0 : index
    %37 = vector.load %arg9[%c0_15, %c0_16] : memref<1x128xf32, #tpu.memory_space<vmem>>, vector<1x128xf32>
    tpu.vector_store %arg9[%c0_15, %c0_16], %36 {strides = array<i32>} : memref<1x128xf32, #tpu.memory_space<vmem>>, vector<1x128xf32>,
    %cst_17 = arith.constant 4.000000e+00 : f32
    %38 = vector.broadcast %cst_17 : f32 to vector<8x128xf32>
    %39 = arith.cmpf ole, %34, %38 : vector<8x128xf32>
    %40 = arith.andi %26, %39 : vector<8x128xi1>
    %41 = vector.extract_strided_slice %40 {offsets = [0, 0], sizes = [8, 8], strides = [1, 1]} : vector<8x128xi1> to vector<8x8xi1>
    %42 = arith.extui %41 : vector<8x8xi1> to vector<8x8xi8>
    %c0_18 = arith.constant 0 : index
    %c0_19 = arith.constant 0 : index
    %c0_20 = arith.constant 0 : index
    %43 = vector.load %arg6[%c0_18, %c0_19, %c0_20] : memref<1x8x8xi8, #tpu.memory_space<vmem>>, vector<1x8x8xi8>
    %44 = vector.shape_cast %43 : vector<1x8x8xi8> to vector<8x8xi8>
    %45 = vector.shape_cast %42 : vector<8x8xi8> to vector<1x8x8xi8>
    tpu.vector_store %arg6[%c0_18, %c0_19, %c0_20], %45 {strides = array<i32>} : memref<1x8x8xi8, #tpu.memory_space<vmem>>, vector<1x8x8xi8>,
    %c0_21 = arith.constant 0 : index
    %c0_22 = arith.constant 0 : index
    %c0_23 = arith.constant 0 : index
    %46 = vector.load %arg7[%c0_21, %c0_22, %c0_23] : memref<1x8x1xf32, #tpu.memory_space<vmem>>, vector<1x8x1xf32>
    %47 = vector.shape_cast %46 : vector<1x8x1xf32> to vector<8x1xf32>
    %48 = vector.shape_cast %17 : vector<8x1xf32> to vector<1x8x1xf32>
    tpu.vector_store %arg7[%c0_21, %c0_22, %c0_23], %48 {strides = array<i32>} : memref<1x8x1xf32, #tpu.memory_space<vmem>>, vector<1x8x1xf32>,
    %49 = vector.extract_strided_slice %9 {offsets = [0, 0], sizes = [8, 8], strides = [1, 1]} : vector<8x128xf32> to vector<8x8xf32>
    %c0_24 = arith.constant 0 : index
    %c0_25 = arith.constant 0 : index
    %c0_26 = arith.constant 0 : index
    %50 = vector.load %arg8[%c0_24, %c0_25, %c0_26] : memref<1x8x8xf32, #tpu.memory_space<vmem>>, vector<1x8x8xf32>
    %51 = vector.shape_cast %50 : vector<1x8x8xf32> to vector<8x8xf32>
    %52 = vector.shape_cast %49 : vector<8x8xf32> to vector<1x8x8xf32>
    tpu.vector_store %arg8[%c0_24, %c0_25, %c0_26], %52 {strides = array<i32>} : memref<1x8x8xf32, #tpu.memory_space<vmem>>, vector<1x8x8xf32>,
    return
  }
  func.func @transform_0(%arg0: i32, %arg1: i32) -> (i32, i32, i32) {
    %c0_i32 = arith.constant 0 : i32
    %c0_i32_0 = arith.constant 0 : i32
    return %arg0, %arg1, %c0_i32 : i32, i32, i32
  }
  func.func @transform_1(%arg0: i32, %arg1: i32) -> (i32, i32) {
    %c0_i32 = arith.constant 0 : i32
    %c0_i32_0 = arith.constant 0 : i32
    %c0_i32_1 = arith.constant 0 : i32
    return %c0_i32, %c0_i32_0 : i32, i32
  }
  func.func @transform_2(%arg0: i32, %arg1: i32) -> (i32, i32) {
    %c0_i32 = arith.constant 0 : i32
    %c0_i32_0 = arith.constant 0 : i32
    %c0_i32_1 = arith.constant 0 : i32
    return %c0_i32, %c0_i32_0 : i32, i32
  }
  func.func @transform_3(%arg0: i32, %arg1: i32) -> (i32, i32) {
    %c0_i32 = arith.constant 0 : i32
    %c0_i32_0 = arith.constant 0 : i32
    %c0_i32_1 = arith.constant 0 : i32
    return %c0_i32, %c0_i32_0 : i32, i32
  }
  func.func @transform_4(%arg0: i32, %arg1: i32) -> (i32, i32, i32) {
    %c0_i32 = arith.constant 0 : i32
    %c0_i32_0 = arith.constant 0 : i32
    return %arg0, %arg1, %c0_i32 : i32, i32, i32
  }
  func.func @transform_5(%arg0: i32, %arg1: i32) -> (i32, i32, i32) {
    %c0_i32 = arith.constant 0 : i32
    %c0_i32_0 = arith.constant 0 : i32
    return %arg0, %arg1, %c0_i32 : i32, i32, i32
  }
  func.func @transform_6(%arg0: i32, %arg1: i32) -> (i32, i32, i32) {
    %c0_i32 = arith.constant 0 : i32
    %c0_i32_0 = arith.constant 0 : i32
    return %arg0, %arg1, %c0_i32 : i32, i32, i32
  }
}

module attributes {stable_mosaic.version = 11 : i64} {
  func.func @_router_kernel(%arg0: i32, %arg1: i32, %arg2: memref<1x8x32xf32, #tpu.memory_space<vmem>>, %arg3: memref<32x128xf32, #tpu.memory_space<vmem>>, %arg4: memref<1x128xf32, #tpu.memory_space<vmem>>, %arg5: memref<8x8xbf16, #tpu.memory_space<vmem>>, %arg6: memref<1x8x8xi8, #tpu.memory_space<vmem>>, %arg7: memref<1x8x1xf32, #tpu.memory_space<vmem>>, %arg8: memref<1x8x8xf32, #tpu.memory_space<vmem>>, %arg9: memref<1x128xf32, #tpu.memory_space<vmem>>) attributes {dimension_semantics = [#tpu.dimension_semantics<parallel>, #tpu.dimension_semantics<arbitrary>], iteration_bounds = array<i64: 2, 1>, scalar_prefetch = 0 : i64, scratch_operands = 1 : i64, tpu.core_type = #tpu.core_type<tc>, window_params = [{transform_indices = @transform_0, window_bounds = array<i64: 1, 8, 32>}, {pipeline_mode = #tpu.pipeline_mode<synchronous>, transform_indices = @transform_1, window_bounds = array<i64: 32, 128>}, {pipeline_mode = #tpu.pipeline_mode<synchronous>, transform_indices = @transform_2, window_bounds = array<i64: 1, 128>}, {pipeline_mode = #tpu.pipeline_mode<synchronous>, transform_indices = @transform_3, window_bounds = array<i64: 8, 8>}, {transform_indices = @transform_4, window_bounds = array<i64: 1, 8, 8>}, {transform_indices = @transform_5, window_bounds = array<i64: 1, 8, 1>}, {transform_indices = @transform_6, window_bounds = array<i64: 1, 8, 8>}]} {
    %c0_i32 = arith.constant 0 : i32
    %0 = arith.cmpi eq, %arg1, %c0_i32 : i32
    %1 = arith.extui %0 : i1 to i32
    %c0_i32_0 = arith.constant 0 : i32
    %2 = arith.cmpi ne, %1, %c0_i32_0 : i32
    scf.if %2 {
      %cst_27 = arith.constant 0.000000e+00 : f32
      %53 = vector.broadcast %cst_27 : f32 to vector<1x128xf32>
      %c0_28 = arith.constant 0 : index
      %c0_29 = arith.constant 0 : index
      %54 = vector.load %arg9[%c0_28, %c0_29] : memref<1x128xf32, #tpu.memory_space<vmem>>, vector<1x128xf32>
      tpu.vector_store %arg9[%c0_28, %c0_29], %53 {strides = array<i32>} : memref<1x128xf32, #tpu.memory_space<vmem>>, vector<1x128xf32>,
    } else {
    }
    %c0 = arith.constant 0 : index
    %c0_1 = arith.constant 0 : index
    %c0_2 = arith.constant 0 : index
    %3 = vector.load %arg2[%c0, %c0_1, %c0_2] : memref<1x8x32xf32, #tpu.memory_space<vmem>>, vector<1x8x32xf32>
    %4 = vector.shape_cast %3 : vector<1x8x32xf32> to vector<8x32xf32>
    %c0_3 = arith.constant 0 : index
    %c0_4 = arith.constant 0 : index
    %5 = vector.load %arg3[%c0_3, %c0_4] : memref<32x128xf32, #tpu.memory_space<vmem>>, vector<32x128xf32>
    %cst = arith.constant dense<0.000000e+00> : vector<8x128xf32>
    %6 = tpu.matmul %4, %5, %cst {dimension_numbers = #tpu.dot_dimension_numbers<[1], [0], [0], [1], [0, 0, 1, 1], [], []>} : vector<8x32xf32>, vector<32x128xf32>, vector<8x128xf32> -> vector<8x128xf32>
    %c0_5 = arith.constant 0 : index
    %c0_6 = arith.constant 0 : index
    %7 = vector.load %arg4[%c0_5, %c0_6] : memref<1x128xf32, #tpu.memory_space<vmem>>, vector<1x128xf32>
    %8 = vector.broadcast %7 : vector<1x128xf32> to vector<8x128xf32>
    %9 = arith.addf %6, %8 : vector<8x128xf32>
    %cst_7 = arith.constant dense<0xFF800000> : vector<8xf32>
    %10 = vector.multi_reduction <maximumf>, %9, %cst_7 [1] : vector<8x128xf32> to vector<8xf32>
    %11 = vector.shape_cast %10 : vector<8xf32> to vector<8x1xf32>
    %12 = vector.broadcast %11 : vector<8x1xf32> to vector<8x128xf32>
    %13 = arith.subf %9, %12 : vector<8x128xf32>
    %14 = math.exp %13 : vector<8x128xf32>
    %cst_8 = arith.constant dense<0.000000e+00> : vector<8xf32>
    %15 = vector.multi_reduction <add>, %14, %cst_8 [1] : vector<8x128xf32> to vector<8xf32>
    %16 = vector.shape_cast %15 : vector<8xf32> to vector<8x1xf32>
    %17 = tpu.reciprocal %16 : vector<8x1xf32> -> vector<8x1xf32>
    %18 = tpu.iota {dimensions = array<i32: 1>} : vector<8x128xi32>
    %19 = vector.broadcast %11 : vector<8x1xf32> to vector<8x128xf32>
    %20 = arith.cmpf oge, %9, %19 : vector<8x128xf32>
    %c128_i32 = arith.constant 128 : i32
    %21 = vector.broadcast %c128_i32 : i32 to vector<8x128xi32>
    %22 = arith.select %20, %18, %21 : vector<8x128xi1>, vector<8x128xi32>
    %cst_9 = arith.constant dense<2147483647> : vector<8xi32>
    %23 = vector.multi_reduction <minsi>, %22, %cst_9 [1] : vector<8x128xi32> to vector<8xi32>
    %24 = vector.shape_cast %23 : vector<8xi32> to vector<8x1xi32>
    %25 = vector.broadcast %24 : vector<8x1xi32> to vector<8x128xi32>
    %26 = arith.cmpi eq, %18, %25 : vector<8x128xi32>
    %c0_10 = arith.constant 0 : index
    %c0_11 = arith.constant 0 : index
    %27 = vector.load %arg5[%c0_10, %c0_11] : memref<8x8xbf16, #tpu.memory_space<vmem>>, vector<8x8xbf16>
    %28 = arith.extui %26 : vector<8x128xi1> to vector<8x128xi32>
    %29 = arith.sitofp %28 : vector<8x128xi32> to vector<8x128xf32>
    %30 = arith.truncf %29 : vector<8x128xf32> to vector<8x128xbf16>
    %cst_12 = arith.constant dense<0.000000e+00> : vector<8x128xf32>
    %31 = tpu.matmul %27, %30, %cst_12 {dimension_numbers = #tpu.dot_dimension_numbers<[1], [0], [0], [1], [0, 0, 1, 1], [], []>} : vector<8x8xbf16>, vector<8x128xbf16>, vector<8x128xf32> -> vector<8x128xf32>
    %c0_13 = arith.constant 0 : index
    %c0_14 = arith.constant 0 : index
    %32 = vector.load %arg9[%c0_13, %c0_14] : memref<1x128xf32, #tpu.memory_space<vmem>>, vector<1x128xf32>
    %33 = vector.broadcast %32 : vector<1x128xf32> to vector<8x128xf32>
    %34 = arith.addf %31, %33 : vector<8x128xf32>
    %35 = vector.extract_strided_slice %31 {offsets = [7, 0], sizes = [1, 128], strides = [1, 1]} : vector<8x128xf32> to vector<1x128xf32>
    %36 = arith.addf %32, %35 : vector<1x128xf32>
    %c0_15 = arith.constant 0 : index
    %c0_16 = arith.constant 0 : index
    %37 = vector.load %arg9[%c0_15, %c0_16] : memref<1x128xf32, #tpu.memory_space<vmem>>, vector<1x128xf32>
    tpu.vector_store %arg9[%c0_15, %c0_16], %36 {strides = array<i32>} : memref<1x128xf32, #tpu.memory_space<vmem>>, vector<1x128xf32>,
    %cst_17 = arith.constant 4.000000e+00 : f32
    %38 = vector.broadcast %cst_17 : f32 to vector<8x128xf32>
    %39 = arith.cmpf ole, %34, %38 : vector<8x128xf32>
    %40 = arith.andi %26, %39 : vector<8x128xi1>
    %41 = vector.extract_strided_slice %40 {offsets = [0, 0], sizes = [8, 8], strides = [1, 1]} : vector<8x128xi1> to vector<8x8xi1>
    %42 = arith.extui %41 : vector<8x8xi1> to vector<8x8xi8>
    %c0_18 = arith.constant 0 : index
    %c0_19 = arith.constant 0 : index
    %c0_20 = arith.constant 0 : index
    %43 = vector.load %arg6[%c0_18, %c0_19, %c0_20] : memref<1x8x8xi8, #tpu.memory_space<vmem>>, vector<1x8x8xi8>
    %44 = vector.shape_cast %43 : vector<1x8x8xi8> to vector<8x8xi8>
    %45 = vector.shape_cast %42 : vector<8x8xi8> to vector<1x8x8xi8>
    tpu.vector_store %arg6[%c0_18, %c0_19, %c0_20], %45 {strides = array<i32>} : memref<1x8x8xi8, #tpu.memory_space<vmem>>, vector<1x8x8xi8>,
    %c0_21 = arith.constant 0 : index
    %c0_22 = arith.constant 0 : index
    %c0_23 = arith.constant 0 : index
    %46 = vector.load %arg7[%c0_21, %c0_22, %c0_23] : memref<1x8x1xf32, #tpu.memory_space<vmem>>, vector<1x8x1xf32>
    %47 = vector.shape_cast %46 : vector<1x8x1xf32> to vector<8x1xf32>
    %48 = vector.shape_cast %17 : vector<8x1xf32> to vector<1x8x1xf32>
    tpu.vector_store %arg7[%c0_21, %c0_22, %c0_23], %48 {strides = array<i32>} : memref<1x8x1xf32, #tpu.memory_space<vmem>>, vector<1x8x1xf32>,
    %49 = vector.extract_strided_slice %9 {offsets = [0, 0], sizes = [8, 8], strides = [1, 1]} : vector<8x128xf32> to vector<8x8xf32>
    %c0_24 = arith.constant 0 : index
    %c0_25 = arith.constant 0 : index
    %c0_26 = arith.constant 0 : index
    %50 = vector.load %arg8[%c0_24, %c0_25, %c0_26] : memref<1x8x8xf32, #tpu.memory_space<vmem>>, vector<1x8x8xf32>
    %51 = vector.shape_cast %50 : vector<1x8x8xf32> to vector<8x8xf32>
    %52 = vector.shape_cast %49 : vector<8x8xf32> to vector<1x8x8xf32>
    tpu.vector_store %arg8[%c0_24, %c0_25, %c0_26], %52 {strides = array<i32>} : memref<1x8x8xf32, #tpu.memory_space<vmem>>, vector<1x8x8xf32>,
    return
  }
  func.func @transform_0(%arg0: i32, %arg1: i32) -> (i32, i32, i32) {
    %c0_i32 = arith.constant 0 : i32
    %c0_i32_0 = arith.constant 0 : i32
    return %arg0, %arg1, %c0_i32 : i32, i32, i32
  }
  func.func @transform_1(%arg0: i32, %arg1: i32) -> (i32, i32) {
    %c0_i32 = arith.constant 0 : i32
    %c0_i32_0 = arith.constant 0 : i32
    %c0_i32_1 = arith.constant 0 : i32
    return %c0_i32, %c0_i32_0 : i32, i32
  }
  func.func @transform_2(%arg0: i32, %arg1: i32) -> (i32, i32) {
    %c0_i32 = arith.constant 0 : i32
    %c0_i32_0 = arith.constant 0 : i32
    %c0_i32_1 = arith.constant 0 : i32
    return %c0_i32, %c0_i32_0 : i32, i32
  }
  func.func @transform_3(%arg0: i32, %arg1: i32) -> (i32, i32) {
    %c0_i32 = arith.constant 0 : i32
    %c0_i32_0 = arith.constant 0 : i32
    %c0_i32_1 = arith.constant 0 : i32
    return %c0_i32, %c0_i32_0 : i32, i32
  }
  func.func @transform_4(%arg0: i32, %arg1: i32) -> (i32, i32, i32) {
    %c0_i32 = arith.constant 0 : i32
    %c0_i32_0 = arith.constant 0 : i32
    return %arg0, %arg1, %c0_i32 : i32, i32, i32
  }
  func.func @transform_5(%arg0: i32, %arg1: i32) -> (i32, i32, i32) {
    %c0_i32 = arith.constant 0 : i32
    %c0_i32_0 = arith.constant 0 : i32
    return %arg0, %arg1, %c0_i32 : i32, i32, i32
  }
  func.func @transform_6(%arg0: i32, %arg1: i32) -> (i32, i32, i32) {
    %c0_i32 = arith.constant 0 : i32
    %c0_i32_0 = arith.constant 0 : i32
    return %arg0, %arg1, %c0_i32 : i32, i32, i32
  }
}

</mosaic_0001>

<bundles_post_ra>
// kernel: tpu_custom_call.1
= control target key start
LH: loop header
LB: loop body
LE: loop exit
PB: predicated region body
PF: predicated region fallthrough
CT: control target
= control target key end

     0   :  { %s1245_s0 = inlined_call_operand.hbm [shape: f32[2,8,32], index: 0, kind: input, shape index: {}]   ;;  %s1246_s1 = inlined_call_operand.hbm [shape: f32[32,128], index: 1, kind: input, shape index: {}]   ;;  %s1247_s2 = inlined_call_operand.vmem [shape: f32[1,128], index: 2, kind: input, shape index: {}]   ;;  %s1248_s3 = inlined_call_operand.hbm [shape: bf16[8,8], index: 3, kind: input, shape index: {}]   ;;  %s1249_s4 = inlined_call_operand.hbm [shape: s8[2,8,8], index: 4, kind: output, shape index: {0}]   ;;  %s1250_s5 = inlined_call_operand.vmem [shape: f32[2,8,1], index: 5, kind: output, shape index: {1}]   ;;  %s1251_s6 = inlined_call_operand.hbm [shape: f32[2,8,8], index: 6, kind: output, shape index: {2}]  }
   0x1   :  { %1252 = sst [smem:[#allocation16_spill]] %s1245_s0 }
   0x2   :  { %1253 = sst [smem:[#allocation17_spill]] %s1246_s1 }
   0x3   :  { %12 = vsyncpa [#allocation4], 0 }
   0x4   :  { %14 = vsyncpa [#allocation4 + $0x1], 0 }
   0x5   :  { %15 = vsyncpa [#allocation7], 0 }
   0x6   :  { %16 = vsyncpa [#allocation5], 0 }
   0x7   :  { %18 = vsyncpa [#allocation5 + $0x1], 0 }
   0x8   :  { %19 = vsyncpa [#allocation11], 0 }
   0x9   :  { %21 = vsyncpa [#allocation11 + $0x1], 0  ;;  %s1063_s21 = smov 0   ;;  %s1065_s22 = smov 0  }
   0xa   :  { %s1067_s23 = smov 0   ;;  %s1069_s24 = smov 0  }
   0xb   :  { %s1071_s25 = smov 0   ;;  %s1073_s26 = smov 0  }
   0xc LB: > { %s690_s27 = sadd.s32 4294967295, %s1020_s26   ;;  %p692_p0 = scmp.ge.s32.totalorder %s1020_s26, 1  ;;  %s1020_s26 = sphi %s1073_s26, %s27_s26   ;;  %s1016_s25 = sphi %s1071_s25, %s1265_s25   ;;  %s1012_s24 = sphi %s1069_s24, %s1264_s24   ;;  %s1008_s23 = sphi %s1067_s23, %s1263_s23   ;;  %s1004_s22 = sphi %s1065_s22, %s1262_s22   ;;  %s1000_s21 = sphi %s1063_s21, %s1261_s21  }
   0xd   : > { %p1097_p1 = scmp.eq.s32.totalorder %s690_s27, 0  ;;  %p219_p2 = scmp.lt.s32.totalorder %s1020_s26, 3 }
   0xe   : > { %s1255_s1 = sld [smem:[#allocation17_spill]]  ;;  %s1022_s9 = smov [#allocation6]  }
   0xf   : > { %p1105_p3 = pnand %p692_p0, %p219_p2  ;;  %s232_s10 = sshll.u32 %s1022_s9, 4  ;;  %s233_s10 = int_to_ptr.vmem [resolvable:$true] %s232_s10 }
  0x10   : > { %p695_p6 = scmp.ge.s32.totalorder %s1020_s26, 2  ;;  %s248_s13 = sshll.u32 %s1248_s3, 4  ;;  %s249_s13 = int_to_ptr.hbm [resolvable:$true] %s248_s13 }
  0x11   : > { %p728_p4 = pneg %p1105_p3  ;;  %s1023_s14 = smov 128  }
  0x12   : > { %s1024_s15 = smov 8   ;;  %s1025_s16 = smov [#allocation8]  }
  0x13   : > { %p729_p5 = pnand %p728_p4, %p1097_p1  ;;  %s250_s17 = sshll.u32 %s1025_s16, 4  ;;  %s251_s17 = int_to_ptr.vmem [resolvable:$true] %s250_s17 }
  0x14   : > { %s230_s7 = sshll.u32 %s1255_s1, 4  ;;  %s39_s18 = sadd.s32 1, %s1016_s25  ;;  %s231_s7 = int_to_ptr.hbm [resolvable:$true] %s230_s7 }
  0x15   : > { %731 = dma.hbm_to_vmem [thread:$0]  (!%p729_p5), %s231_s7, 512, %s233_s10, [#allocation7], %s1023_s14, %s1023_s14, %s1024_s15  }
  0x16   : > { %734 = dma.hbm_to_vmem [thread:$0]  (!%p729_p5), %s249_s13, 64, %s251_s17, [#allocation7]  }
  0x17   : > { %s691_s19 = sadd.s32 4294967294, %s1020_s26   ;;  %p41_p7 = scmp.ge.s32.totalorder %s39_s18, 2 }
  0x18   : > { %s48_s20 = sadd.s32 1, %s1008_s23  ;;  %p55_p8 = scmp.ne.s32.totalorder %s1008_s23, %s1004_s22 }
  0x19   : > { %s1267_s18 = smov (%p41_p7, %s39_s18), 0  ;;  %p56_p9 = scmp.eq.s32.totalorder %s1020_s26, 0 }
  0x1a   : > { %p61_p10 = scmp.ne.s32.totalorder %s1004_s22, %s1000_s21  ;;  %s43_s29 = ssub.s32 %s1016_s25, %s1267_s18 }
  0x1b   : > { %p150_p11 = scmp.eq.s32.totalorder %s690_s27, 1  ;;  %p46_p12 = scmp.eq.s32.totalorder %s43_s29, 0 }
  0x1c   : > { %p1133_p13 = por %p1097_p1, %p61_p10  ;;  %p156_p2 = scmp.eq.s32.totalorder %s691_s19, 1 }
  0x1d   : > { %p1137_p0 = por %p150_p11, %p55_p8  ;;  %p57_p4 = por %p56_p9, %p55_p8 }
  0x1e   : > { %s1142_s9 = scalar_select %p46_p12, %s1008_s23, %s48_s20  }
  0x1f   : > { %p1144_p5 = por %p156_p2, %p61_p10  ;;  %s261_s11 = sand.u32 1, %s1008_s23  }
  0x20   : > { %s697_s27 = sshll.u32 %s1016_s25, 3  ;;  %p748_p7 = scmp.lt.s32.totalorder %s1020_s26, 2 }
  0x21   : > { %s696_s12 = sshll.u32 %s261_s11, 3  ;;  %s1260_s0 = sld [smem:[#allocation16_spill]] }
  0x22   : > { %s265_s17 = scalar_lea.vmem [#allocation3], %s696_s12  ;;  %p736_p11 = pnand %p748_p7, %p57_p4 }
  0x23   : > { %s274_s29 = sshll.u32 %s265_s17, 4  ;;  %s262_s19 = scalar_lea.sflag [#allocation4], %s261_s11  ;;  %s275_s29 = int_to_ptr.vmem [resolvable:$true] %s274_s29 }
  0x24   : > { %s1157_s20 = sand.u32 (!%p1105_p3), 1, %s1004_s22  }
  0x25   : > { %283 = sbr.rel (%p1105_p3) target bundleno = 689 (0x2b1), region = 36  ;;  %s699_s1 = sshll.u32 (!%p1105_p3), %s1157_s20, 3 }
  0x26   : > { %s286_s13 = scalar_lea.sflag (!%p1105_p3), [#allocation4], %s1157_s20 }
  0x27   : > { %s270_s15 = scalar_lea.hbm %s1260_s0, %s697_s27  ;;  %s289_s27 = scalar_lea.vmem (!%p1105_p3), [#allocation3], %s699_s1 }
  0x28   : > { %s272_s16 = sshll.u32 %s270_s15, 4  ;;  %s273_s16 = int_to_ptr.hbm [resolvable:$true] %s272_s16 }
  0x29   : > { %738 = dma.hbm_to_vmem [thread:$0]  (!%p736_p11), %s273_s16, 128, %s275_s29, %s262_s19  }
  0x2a   : > { %983 = dma.done.wait (%p1133_p13), %s286_s13, 128  }
  0x2b   : > { %985 = vsyncadd (%p1133_p13), %s286_s13, 4294967168 }
  0x2c   : > { %987 = dma.done.wait (%p1097_p1), [#allocation7], 576  }
  0x2d   : > { %989 = vsyncadd (%p1097_p1), [#allocation7], 4294966720  ;;  %v360_v0 = vld [vmem:[#allocation6 + $0x18] sm:$0xff]  ;;  %v359_v1 = vld [vmem:[#allocation6 + $0x10] sm:$0xff]  ;;  %vm365_vm0 = vcmask 261120   ;;  %vm433_vm1 = vcmask 64512   ;;  %v410_v8 = vlaneseq }
  0x2e   : > { %381 = vmatpush.msra.mxu0 %v360_v0  ;;  %v358_v2 = vld [vmem:[#allocation6 + $0x8] sm:$0xff]  ;;  %v357_v3 = vld [vmem:[#allocation6] sm:$0xff]  ;;  %v356_v4 = vld [vmem:[%s289_s27] sm:$0xff]  ;;  %s1172_s28 = scalar_lea.vmem [#allocation10], %s699_s1  ;;  %v1026_v21 = vmov 0.0   ;;  %vm437_vm5 = vcmask 1043456  }
  0x2f   : > { %v806_v5 = vld [vmem:[%s1247_s2] ss:$0 sm:$0xff]  ;;  %v1176_v9 = vand.u32 127, %v410_v8  ;;  %355 = vst [vmem:[#allocation2] sm:$0x1] %v1026_v21  ;;  %p341_p1 = scmp.lt.s32.totalorder %s1012_s24, 1 }
  0x30   : > { %382 = vmatpush.msra.mxu0 %v359_v1  ;;  %v429_v31 = vld [vmem:[#allocation8] sm:$0xf]  ;;  %s711_s12 = sshll.u32 %s1012_s24, 3  ;;  %vm476_vm8 = vcmask 7168   ;;  %s523_s13 = sshll.u32 %s1172_s28, 4  ;;  %s524_s13 = int_to_ptr.vmem [resolvable:$true] %s523_s13 }
  0x31   : > { %s342_s1 = scalar_select %p341_p1, %s1012_s24, 1 }
  0x32   : > { %383 = vmatpush.msra.mxu0 %v358_v2  ;;  %s521_s19 = scalar_lea.hbm %s1251_s6, %s711_s12  ;;  %s492_s8 = scalar_lea.sflag [#allocation11], %s1157_s20 }
  0x33   : > { %s704_s11 = sshll.u32 %s342_s1, 3  ;;  %s525_s27 = sshll.u32 %s521_s19, 4  ;;  %s526_s27 = int_to_ptr.hbm [resolvable:$true] %s525_s27 }
  0x34   : > { %384 = vmatpush.msra.mxu0 %v357_v3  ;;  %s347_s16 = scalar_lea.vmem %s1250_s5, %s704_s11  ;;  %s916_s30 = sshra.s32 %s526_s27, 4  ;;  %s917_s30 = int_to_ptr.hbm [resolvable:$true] %s916_s30 }
  0x35   : > { %705 = vmatmul.msk.f32.vlgmr.msra.gmra.mxu0 %vm365_vm0, %v356_v4  ;;  %s918_s1 = scalar_lea.hbm %s917_s30, 8  ;;  %s922_s15 = scalar_lea.hbm %s1251_s6, 16 }
  0x36   : > { %p919_p3 = scmp.ne.s32.totalorder %s917_s30, %s918_s1  ;;  %p923_p10 = scmp.lt.s32.totalorder %s917_s30, %s1251_s6 }
  0x37   : > { %p924_p12 = scmp.lt.s32.totalorder %s922_s15, %s918_s1 }
  0x38   : > { %p920_p8 = pnand %p919_p3, %p1137_p0 }
  0x39   : > { %p925_p13 = por %p924_p12, %p923_p10 }
  0x3a   : > { %p921_p9 = pneg %p920_p8 }
  0x3c   : > { %p926_p2 = pnand %p925_p13, %p921_p9 }
  0xb2   : > { %v386_v6 = vpop.f32.mrf.mxu0 }
  0xb3   : > { %v387_v7 = vadd.f32 %v806_v5, %v386_v6 }
  0xb5   : > { %389 = vmax.xlane.f32.xlu0 %v387_v7  ;;  %478 = vst.msk [vmem:[%s1172_s28] sm:$0xff] %vm433_vm1, %v387_v7 }
 0x128   : > { %v390_v10 = vpop.xlane.xlu0 %389 }
 0x129   : > { %vm412_vm2 = vcmp.ge.f32.partialorder %v387_v7, %v390_v10  ;;  %v391_v14 = vsub.f32 %v387_v7, %v390_v10 }
 0x12a   : > { %v413_v11 = vsel %vm412_vm2, %v1176_v9, 128 }
 0x12b   : > { %v415_v12 = vshra.s32 %v413_v11, 16  ;;  %v414_v15 = vand.u32 65535, %v413_v11  ;;  %v392_v16 = vmul.f32 1.442695, %v391_v14 }
 0x12d   : > { %v417_v13 = vcvt.s32.f32 %v415_v12  ;;  %v416_v18 = vcvt.s32.f32 %v414_v15  ;;  %808 = vpow2.f32 %v392_v16 }
 0x12f   : > { %418 = vmin.xlane.f32.xlu0 %v417_v13 }
 0x133   : > { %v809_v20 = vpop.eup %808 }
 0x1a2   : > { %v419_v17 = vpop.xlane.xlu0 %418 }
 0x1a3   : > { %vm420_vm3 = vcmp.eq.f32.partialorder %v417_v13, %v419_v17  ;;  %v425_v22 = vcvt.f32.s32 %v419_v17 }
 0x1a4   : > { %v421_v19 = vsel %vm420_vm3, %v416_v18, inf }
 0x1a5   : > { %422 = vmin.xlane.f32.xlu1 %v421_v19  ;;  %v426_v24 = vshll.u32 %v425_v22, 16 }
 0x1ad   : > { %394 = vadd.xlane.f32.xlu1 %v809_v20 }
 0x218   : > { %v423_v23 = vpop.xlane.xlu1 %422 }
 0x219   : > { %v424_v25 = vcvt.f32.s32 %v423_v23 }
 0x21b   : > { %v427_v26 = vadd.s32 %v426_v24, %v424_v25 }
 0x21d   : > { %vm428_vm4 = vcmp.eq.s32.totalorder %v1176_v9, %v427_v26 }
 0x21e   : > { %v706_v27 = vsel %vm428_vm4, 1.0, %v1026_v21 }
 0x21f   : > { %v432_v28 = vpack.c.bf16 %v706_v27, %v706_v27 }
 0x220   : > { %v395_v29 = vpop.xlane.xlu1 %394 }
 0x221   : > { %810 = vrcp.f32 %v395_v29  ;;  %v439_v30 = vsel %vm437_vm5, %v432_v28, 0  ;;  %v407_v35 = vand.u32 2147483648, %v395_v29  ;;  %v405_v37 = vand.u32 2147483647, %v395_v29 }
 0x222   : > { %448 = vmatpush.bf16.msra.mxu1 %v439_v30  ;;  %vm401_vm7 = vweird.f32 %v395_v29 }
 0x223   : > { %v408_v39 = vor.u32 1.1754944e-38, %v407_v35  ;;  %vm406_vm10 = vcmp.eq.f32.partialorder %v405_v37, 8.507059e+37 }
 0x225   : > { %707 = vmatmul.msk.bf16.vlgmr.msra.gmra.mxu1 %vm433_vm1, %v429_v31 }
 0x227   : > { %v811_v32 = vpop.eup %810 }
 0x228   : > { %v397_v33 = vmul.f32 %v811_v32, %v395_v29  ;;  %vm402_vm6 = vweird.f32 %v811_v32 }
 0x229   : > { %vm403_vm9 = vmor %vm401_vm7, %vm402_vm6 }
 0x22a   : > { %v398_v34 = vsub.f32 1.0, %v397_v33 }
 0x22c   : > { %v399_v36 = vmul.f32 %v811_v32, %v398_v34 }
 0x22e   : > { %v400_v38 = vadd.f32 %v811_v32, %v399_v36 }
 0x230   : > { %v404_v40 = vsel %vm403_vm9, %v811_v32, %v400_v38 }
 0x231   : > { %v409_v41 = vsel %vm406_vm10, %v408_v39, %v404_v40 }
 0x232   : > { %477 = vst.msk [vmem:[%s347_s16] sm:$0xff] %vm476_vm8, %v409_v41 }
 0x233   : > { %929 = shalt.err (!%p926_p2)
}
 0x234   : > { %725 = dma.vmem_to_hbm [thread:$0]  (%p1137_p0), %s524_s13, 128, %s526_s27, %s492_s8   ;;  %v807_v42 = vld [vmem:[#allocation2] ss:$0 sm:$0xff]  ;;  %v1027_v46 = vmov 0   ;;  %vm474_vm15 = vcmask 58368  }
 0x235   : > { %s702_s28 = sshll.u32 %s1157_s20, 1  ;;  %s710_s12 = sshll.u32 %s1012_s24, 1  ;;  %v454_v45 = vld [vmem:[#allocation2] sm:$0x1] }
 0x236   : > { %s503_s29 = scalar_lea.hbm %s1249_s4, %s710_s12  ;;  %s324_s19 = scalar_lea.vmem [#allocation9], %s702_s28 }
 0x237   : > { %s505_s13 = sshll.u32 %s324_s19, 4  ;;  %s507_s27 = sshll.u32 %s503_s29, 4  ;;  %s506_s13 = int_to_ptr.vmem [resolvable:$true] %s505_s13  ;;  %s508_s27 = int_to_ptr.hbm [resolvable:$true] %s507_s27 }
 0x238   : > { %s480_s24 = scalar_lea.sflag [#allocation5], %s1157_s20  ;;  %s944_s8 = sshra.s32 %s508_s27, 4  ;;  %s945_s8 = int_to_ptr.hbm [resolvable:$true] %s944_s8 }
 0x239   : > { %s946_s30 = scalar_lea.hbm %s945_s8, 2  ;;  %s950_s14 = scalar_lea.hbm %s1249_s4, 4 }
 0x23a   : > { %p947_p4 = scmp.ne.s32.totalorder %s945_s8, %s946_s30  ;;  %p951_p1 = scmp.lt.s32.totalorder %s945_s8, %s1249_s4 }
 0x23b   : > { %p952_p3 = scmp.lt.s32.totalorder %s950_s14, %s946_s30 }
 0x23c   : > { %p948_p7 = pnand %p947_p4, %p1137_p0 }
 0x23d   : > { %p953_p8 = por %p952_p3, %p951_p1 }
 0x23e   : > { %p949_p11 = pneg %p948_p7 }
 0x240   : > { %p954_p9 = pnand %p953_p8, %p949_p11 }
 0x2a2   : > { %v450_v43 = vpop.f32.mrf.mxu1 }
 0x2a3   : > { %v458_v44 = vadd.f32 %v807_v42, %v450_v43  ;;  %460 = vst [vmem:[#allocation1] sm:$0xff] %v450_v43 }
 0x2a5   : > { %vm466_vm11 = vcmp.le.f32.partialorder %v458_v44, 4.0 }
 0x2a6   : > { %vm467_vm12 = vmand %vm428_vm4, %vm466_vm11 }
 0x2a7   : > { %vm468_vm13 = vmpackc.low %vm467_vm12, %vm467_vm12 }
 0x2a8   : > { %v469_v47 = vsel %vm468_vm13, 16711935, %v1027_v46 }
 0x2a9   : > { %v471_v48 = vpack.c.b8 %v469_v47, %v469_v47 }
 0x2aa   : > { %v462_v49 = vld [vmem:[#allocation1 + $0x7] ss:$9 sm:$0xff]  ;;  %v452_v50 = vpop.f32.mrf.mxu1 }
 0x2ab   : > { %v464_v51 = vadd.f32 %v462_v49, %v454_v45  ;;  %vm472_vm14 = vnez %v471_v48 }
 0x2ac   : > { %v473_v52 = vsel %vm472_vm14, 16843009, %v1027_v46 }
 0x2ad   : > { %465 = vst [vmem:[#allocation2] sm:$0x1] %v464_v51 }
 0x2ae   : > { %475 = vst.msk [vmem:[%s324_s19] sm:$0x3] %vm474_vm15, %v473_v52 }
 0x2af   : > { %957 = shalt.err (!%p954_p9)
}
 0x2b0   : > { %724 = dma.vmem_to_hbm [thread:$0]  (%p1137_p0), %s506_s13, 32, %s508_s27, %s480_s24  }
 0x2b1 PF: > { %s537_s20 = sand.u32 1, %s1000_s21   ;;  %p740_p10 = pnand %p695_p6, %p1144_p5 }
 0x2b2   : > { %s538_s28 = scalar_lea.sflag [#allocation5], %s537_s20 }
 0x2b3   : > { %p741_p12 = pneg %p740_p10 }
 0x2b5   : > { %991 = dma.done.wait (%p741_p12), %s538_s28, 32  }
 0x2b6   : > { %993 = vsyncadd (%p741_p12), %s538_s28, 4294967264  ;;  %s558_s12 = scalar_lea.sflag [#allocation11], %s537_s20 }
 0x2b7   : > { %995 = dma.done.wait (%p741_p12), %s558_s12, 128  }
 0x2b8   : > { %997 = vsyncadd (%p741_p12), %s558_s12, 4294967168  ;;  %s27_s26 = sadd.s32 1, %s1020_s26   ;;  %s1261_s21 = smov %s1004_s22 }
 0x2b9   : > { %p24_p13 = scmp.ge.s32.totalorder %s27_s26, 4   ;;  %s1262_s22 = smov %s1008_s23 }
 0x2ba   : > { %s1263_s23 = smov %s1142_s9  ;;  %s1264_s24 = smov %s1016_s25 }
 0x2bb   : > { %s1265_s25 = smov %s1267_s18  ;;  %26 = sbr.rel (!%p24_p13) target bundleno = 12 (0xc), region = 123 }
 0x2c0   :  { %564 = vsyncpa [#allocation4], 1 }
 0x2c1   :  { %566 = vsyncpa [#allocation4 + $0x1], 1 }
 0x2c2   :  { %567 = vsyncpa [#allocation7], 1 }
 0x2c3   :  { %568 = vsyncpa [#allocation5], 1 }
 0x2c4   :  { %570 = vsyncpa [#allocation5 + $0x1], 1 }
 0x2c5   :  { %571 = vsyncpa [#allocation11], 1 }
 0x2c6   :  { %573 = vsyncpa [#allocation11 + $0x1], 1 }

// kernel: tpu_custom_call.1
= control target key start
LH: loop header
LB: loop body
LE: loop exit
PB: predicated region body
PF: predicated region fallthrough
CT: control target
= control target key end

     0   :  { %s1245_s0 = inlined_call_operand.hbm [shape: f32[2,8,32], index: 0, kind: input, shape index: {}]   ;;  %s1246_s1 = inlined_call_operand.hbm [shape: f32[32,128], index: 1, kind: input, shape index: {}]   ;;  %s1247_s2 = inlined_call_operand.vmem [shape: f32[1,128], index: 2, kind: input, shape index: {}]   ;;  %s1248_s3 = inlined_call_operand.hbm [shape: bf16[8,8], index: 3, kind: input, shape index: {}]   ;;  %s1249_s4 = inlined_call_operand.hbm [shape: s8[2,8,8], index: 4, kind: output, shape index: {0}]   ;;  %s1250_s5 = inlined_call_operand.vmem [shape: f32[2,8,1], index: 5, kind: output, shape index: {1}]   ;;  %s1251_s6 = inlined_call_operand.hbm [shape: f32[2,8,8], index: 6, kind: output, shape index: {2}]  }
   0x1   :  { %1252 = sst [smem:[#allocation16_spill]] %s1245_s0 }
   0x2   :  { %1253 = sst [smem:[#allocation17_spill]] %s1246_s1 }
   0x3   :  { %12 = vsyncpa [#allocation4], 0 }
   0x4   :  { %14 = vsyncpa [#allocation4 + $0x1], 0 }
   0x5   :  { %15 = vsyncpa [#allocation7], 0 }
   0x6   :  { %16 = vsyncpa [#allocation5], 0 }
   0x7   :  { %18 = vsyncpa [#allocation5 + $0x1], 0 }
   0x8   :  { %19 = vsyncpa [#allocation11], 0 }
   0x9   :  { %21 = vsyncpa [#allocation11 + $0x1], 0  ;;  %s1063_s21 = smov 0   ;;  %s1065_s22 = smov 0  }
   0xa   :  { %s1067_s23 = smov 0   ;;  %s1069_s24 = smov 0  }
   0xb   :  { %s1071_s25 = smov 0   ;;  %s1073_s26 = smov 0  }
   0xc LB: > { %s690_s27 = sadd.s32 4294967295, %s1020_s26   ;;  %p692_p0 = scmp.ge.s32.totalorder %s1020_s26, 1  ;;  %s1020_s26 = sphi %s1073_s26, %s27_s26   ;;  %s1016_s25 = sphi %s1071_s25, %s1265_s25   ;;  %s1012_s24 = sphi %s1069_s24, %s1264_s24   ;;  %s1008_s23 = sphi %s1067_s23, %s1263_s23   ;;  %s1004_s22 = sphi %s1065_s22, %s1262_s22   ;;  %s1000_s21 = sphi %s1063_s21, %s1261_s21  }
   0xd   : > { %p1097_p1 = scmp.eq.s32.totalorder %s690_s27, 0  ;;  %p219_p2 = scmp.lt.s32.totalorder %s1020_s26, 3 }
   0xe   : > { %s1255_s1 = sld [smem:[#allocation17_spill]]  ;;  %s1022_s9 = smov [#allocation6]  }
   0xf   : > { %p1105_p3 = pnand %p692_p0, %p219_p2  ;;  %s232_s10 = sshll.u32 %s1022_s9, 4  ;;  %s233_s10 = int_to_ptr.vmem [resolvable:$true] %s232_s10 }
  0x10   : > { %p695_p6 = scmp.ge.s32.totalorder %s1020_s26, 2  ;;  %s248_s13 = sshll.u32 %s1248_s3, 4  ;;  %s249_s13 = int_to_ptr.hbm [resolvable:$true] %s248_s13 }
  0x11   : > { %p728_p4 = pneg %p1105_p3  ;;  %s1023_s14 = smov 128  }
  0x12   : > { %s1024_s15 = smov 8   ;;  %s1025_s16 = smov [#allocation8]  }
  0x13   : > { %p729_p5 = pnand %p728_p4, %p1097_p1  ;;  %s250_s17 = sshll.u32 %s1025_s16, 4  ;;  %s251_s17 = int_to_ptr.vmem [resolvable:$true] %s250_s17 }
  0x14   : > { %s230_s7 = sshll.u32 %s1255_s1, 4  ;;  %s39_s18 = sadd.s32 1, %s1016_s25  ;;  %s231_s7 = int_to_ptr.hbm [resolvable:$true] %s230_s7 }
  0x15   : > { %731 = dma.hbm_to_vmem [thread:$0]  (!%p729_p5), %s231_s7, 512, %s233_s10, [#allocation7], %s1023_s14, %s1023_s14, %s1024_s15  }
  0x16   : > { %734 = dma.hbm_to_vmem [thread:$0]  (!%p729_p5), %s249_s13, 64, %s251_s17, [#allocation7]  }
  0x17   : > { %s691_s19 = sadd.s32 4294967294, %s1020_s26   ;;  %p41_p7 = scmp.ge.s32.totalorder %s39_s18, 2 }
  0x18   : > { %s48_s20 = sadd.s32 1, %s1008_s23  ;;  %p55_p8 = scmp.ne.s32.totalorder %s1008_s23, %s1004_s22 }
  0x19   : > { %s1267_s18 = smov (%p41_p7, %s39_s18), 0  ;;  %p56_p9 = scmp.eq.s32.totalorder %s1020_s26, 0 }
  0x1a   : > { %p61_p10 = scmp.ne.s32.totalorder %s1004_s22, %s1000_s21  ;;  %s43_s29 = ssub.s32 %s1016_s25, %s1267_s18 }
  0x1b   : > { %p150_p11 = scmp.eq.s32.totalorder %s690_s27, 1  ;;  %p46_p12 = scmp.eq.s32.totalorder %s43_s29, 0 }
  0x1c   : > { %p1133_p13 = por %p1097_p1, %p61_p10  ;;  %p156_p2 = scmp.eq.s32.totalorder %s691_s19, 1 }
  0x1d   : > { %p1137_p0 = por %p150_p11, %p55_p8  ;;  %p57_p4 = por %p56_p9, %p55_p8 }
  0x1e   : > { %s1142_s9 = scalar_select %p46_p12, %s1008_s23, %s48_s20  }
  0x1f   : > { %p1144_p5 = por %p156_p2, %p61_p10  ;;  %s261_s11 = sand.u32 1, %s1008_s23  }
  0x20   : > { %s697_s27 = sshll.u32 %s1016_s25, 3  ;;  %p748_p7 = scmp.lt.s32.totalorder %s1020_s26, 2 }
  0x21   : > { %s696_s12 = sshll.u32 %s261_s11, 3  ;;  %s1260_s0 = sld [smem:[#allocation16_spill]] }
  0x22   : > { %s265_s17 = scalar_lea.vmem [#allocation3], %s696_s12  ;;  %p736_p11 = pnand %p748_p7, %p57_p4 }
  0x23   : > { %s274_s29 = sshll.u32 %s265_s17, 4  ;;  %s262_s19 = scalar_lea.sflag [#allocation4], %s261_s11  ;;  %s275_s29 = int_to_ptr.vmem [resolvable:$true] %s274_s29 }
  0x24   : > { %s1157_s20 = sand.u32 (!%p1105_p3), 1, %s1004_s22  }
  0x25   : > { %283 = sbr.rel (%p1105_p3) target bundleno = 689 (0x2b1), region = 36  ;;  %s699_s1 = sshll.u32 (!%p1105_p3), %s1157_s20, 3 }
  0x26   : > { %s286_s13 = scalar_lea.sflag (!%p1105_p3), [#allocation4], %s1157_s20 }
  0x27   : > { %s270_s15 = scalar_lea.hbm %s1260_s0, %s697_s27  ;;  %s289_s27 = scalar_lea.vmem (!%p1105_p3), [#allocation3], %s699_s1 }
  0x28   : > { %s272_s16 = sshll.u32 %s270_s15, 4  ;;  %s273_s16 = int_to_ptr.hbm [resolvable:$true] %s272_s16 }
  0x29   : > { %738 = dma.hbm_to_vmem [thread:$0]  (!%p736_p11), %s273_s16, 128, %s275_s29, %s262_s19  }
  0x2a   : > { %983 = dma.done.wait (%p1133_p13), %s286_s13, 128  }
  0x2b   : > { %985 = vsyncadd (%p1133_p13), %s286_s13, 4294967168 }
  0x2c   : > { %987 = dma.done.wait (%p1097_p1), [#allocation7], 576  }
  0x2d   : > { %989 = vsyncadd (%p1097_p1), [#allocation7], 4294966720  ;;  %v360_v0 = vld [vmem:[#allocation6 + $0x18] sm:$0xff]  ;;  %v359_v1 = vld [vmem:[#allocation6 + $0x10] sm:$0xff]  ;;  %vm365_vm0 = vcmask 261120   ;;  %vm433_vm1 = vcmask 64512   ;;  %v410_v8 = vlaneseq }
  0x2e   : > { %381 = vmatpush.msra.mxu0 %v360_v0  ;;  %v358_v2 = vld [vmem:[#allocation6 + $0x8] sm:$0xff]  ;;  %v357_v3 = vld [vmem:[#allocation6] sm:$0xff]  ;;  %v356_v4 = vld [vmem:[%s289_s27] sm:$0xff]  ;;  %s1172_s28 = scalar_lea.vmem [#allocation10], %s699_s1  ;;  %v1026_v21 = vmov 0.0   ;;  %vm437_vm5 = vcmask 1043456  }
  0x2f   : > { %v806_v5 = vld [vmem:[%s1247_s2] ss:$0 sm:$0xff]  ;;  %v1176_v9 = vand.u32 127, %v410_v8  ;;  %355 = vst [vmem:[#allocation2] sm:$0x1] %v1026_v21  ;;  %p341_p1 = scmp.lt.s32.totalorder %s1012_s24, 1 }
  0x30   : > { %382 = vmatpush.msra.mxu0 %v359_v1  ;;  %v429_v31 = vld [vmem:[#allocation8] sm:$0xf]  ;;  %s711_s12 = sshll.u32 %s1012_s24, 3  ;;  %vm476_vm8 = vcmask 7168   ;;  %s523_s13 = sshll.u32 %s1172_s28, 4  ;;  %s524_s13 = int_to_ptr.vmem [resolvable:$true] %s523_s13 }
  0x31   : > { %s342_s1 = scalar_select %p341_p1, %s1012_s24, 1 }
  0x32   : > { %383 = vmatpush.msra.mxu0 %v358_v2  ;;  %s521_s19 = scalar_lea.hbm %s1251_s6, %s711_s12  ;;  %s492_s8 = scalar_lea.sflag [#allocation11], %s1157_s20 }
  0x33   : > { %s704_s11 = sshll.u32 %s342_s1, 3  ;;  %s525_s27 = sshll.u32 %s521_s19, 4  ;;  %s526_s27 = int_to_ptr.hbm [resolvable:$true] %s525_s27 }
  0x34   : > { %384 = vmatpush.msra.mxu0 %v357_v3  ;;  %s347_s16 = scalar_lea.vmem %s1250_s5, %s704_s11  ;;  %s916_s30 = sshra.s32 %s526_s27, 4  ;;  %s917_s30 = int_to_ptr.hbm [resolvable:$true] %s916_s30 }
  0x35   : > { %705 = vmatmul.msk.f32.vlgmr.msra.gmra.mxu0 %vm365_vm0, %v356_v4  ;;  %s918_s1 = scalar_lea.hbm %s917_s30, 8  ;;  %s922_s15 = scalar_lea.hbm %s1251_s6, 16 }
  0x36   : > { %p919_p3 = scmp.ne.s32.totalorder %s917_s30, %s918_s1  ;;  %p923_p10 = scmp.lt.s32.totalorder %s917_s30, %s1251_s6 }
  0x37   : > { %p924_p12 = scmp.lt.s32.totalorder %s922_s15, %s918_s1 }
  0x38   : > { %p920_p8 = pnand %p919_p3, %p1137_p0 }
  0x39   : > { %p925_p13 = por %p924_p12, %p923_p10 }
  0x3a   : > { %p921_p9 = pneg %p920_p8 }
  0x3c   : > { %p926_p2 = pnand %p925_p13, %p921_p9 }
  0xb2   : > { %v386_v6 = vpop.f32.mrf.mxu0 }
  0xb3   : > { %v387_v7 = vadd.f32 %v806_v5, %v386_v6 }
  0xb5   : > { %389 = vmax.xlane.f32.xlu0 %v387_v7  ;;  %478 = vst.msk [vmem:[%s1172_s28] sm:$0xff] %vm433_vm1, %v387_v7 }
 0x128   : > { %v390_v10 = vpop.xlane.xlu0 %389 }
 0x129   : > { %vm412_vm2 = vcmp.ge.f32.partialorder %v387_v7, %v390_v10  ;;  %v391_v14 = vsub.f32 %v387_v7, %v390_v10 }
 0x12a   : > { %v413_v11 = vsel %vm412_vm2, %v1176_v9, 128 }
 0x12b   : > { %v415_v12 = vshra.s32 %v413_v11, 16  ;;  %v414_v15 = vand.u32 65535, %v413_v11  ;;  %v392_v16 = vmul.f32 1.442695, %v391_v14 }
 0x12d   : > { %v417_v13 = vcvt.s32.f32 %v415_v12  ;;  %v416_v18 = vcvt.s32.f32 %v414_v15  ;;  %808 = vpow2.f32 %v392_v16 }
 0x12f   : > { %418 = vmin.xlane.f32.xlu0 %v417_v13 }
 0x133   : > { %v809_v20 = vpop.eup %808 }
 0x1a2   : > { %v419_v17 = vpop.xlane.xlu0 %418 }
 0x1a3   : > { %vm420_vm3 = vcmp.eq.f32.partialorder %v417_v13, %v419_v17  ;;  %v425_v22 = vcvt.f32.s32 %v419_v17 }
 0x1a4   : > { %v421_v19 = vsel %vm420_vm3, %v416_v18, inf }
 0x1a5   : > { %422 = vmin.xlane.f32.xlu1 %v421_v19  ;;  %v426_v24 = vshll.u32 %v425_v22, 16 }
 0x1ad   : > { %394 = vadd.xlane.f32.xlu1 %v809_v20 }
 0x218   : > { %v423_v23 = vpop.xlane.xlu1 %422 }
 0x219   : > { %v424_v25 = vcvt.f32.s32 %v423_v23 }
 0x21b   : > { %v427_v26 = vadd.s32 %v426_v24, %v424_v25 }
 0x21d   : > { %vm428_vm4 = vcmp.eq.s32.totalorder %v1176_v9, %v427_v26 }
 0x21e   : > { %v706_v27 = vsel %vm428_vm4, 1.0, %v1026_v21 }
 0x21f   : > { %v432_v28 = vpack.c.bf16 %v706_v27, %v706_v27 }
 0x220   : > { %v395_v29 = vpop.xlane.xlu1 %394 }
 0x221   : > { %810 = vrcp.f32 %v395_v29  ;;  %v439_v30 = vsel %vm437_vm5, %v432_v28, 0  ;;  %v407_v35 = vand.u32 2147483648, %v395_v29  ;;  %v405_v37 = vand.u32 2147483647, %v395_v29 }
 0x222   : > { %448 = vmatpush.bf16.msra.mxu1 %v439_v30  ;;  %vm401_vm7 = vweird.f32 %v395_v29 }
 0x223   : > { %v408_v39 = vor.u32 1.1754944e-38, %v407_v35  ;;  %vm406_vm10 = vcmp.eq.f32.partialorder %v405_v37, 8.507059e+37 }
 0x225   : > { %707 = vmatmul.msk.bf16.vlgmr.msra.gmra.mxu1 %vm433_vm1, %v429_v31 }
 0x227   : > { %v811_v32 = vpop.eup %810 }
 0x228   : > { %v397_v33 = vmul.f32 %v811_v32, %v395_v29  ;;  %vm402_vm6 = vweird.f32 %v811_v32 }
 0x229   : > { %vm403_vm9 = vmor %vm401_vm7, %vm402_vm6 }
 0x22a   : > { %v398_v34 = vsub.f32 1.0, %v397_v33 }
 0x22c   : > { %v399_v36 = vmul.f32 %v811_v32, %v398_v34 }
 0x22e   : > { %v400_v38 = vadd.f32 %v811_v32, %v399_v36 }
 0x230   : > { %v404_v40 = vsel %vm403_vm9, %v811_v32, %v400_v38 }
 0x231   : > { %v409_v41 = vsel %vm406_vm10, %v408_v39, %v404_v40 }
 0x232   : > { %477 = vst.msk [vmem:[%s347_s16] sm:$0xff] %vm476_vm8, %v409_v41 }
 0x233   : > { %929 = shalt.err (!%p926_p2)
}
 0x234   : > { %725 = dma.vmem_to_hbm [thread:$0]  (%p1137_p0), %s524_s13, 128, %s526_s27, %s492_s8   ;;  %v807_v42 = vld [vmem:[#allocation2] ss:$0 sm:$0xff]  ;;  %v1027_v46 = vmov 0   ;;  %vm474_vm15 = vcmask 58368  }
 0x235   : > { %s702_s28 = sshll.u32 %s1157_s20, 1  ;;  %s710_s12 = sshll.u32 %s1012_s24, 1  ;;  %v454_v45 = vld [vmem:[#allocation2] sm:$0x1] }
 0x236   : > { %s503_s29 = scalar_lea.hbm %s1249_s4, %s710_s12  ;;  %s324_s19 = scalar_lea.vmem [#allocation9], %s702_s28 }
 0x237   : > { %s505_s13 = sshll.u32 %s324_s19, 4  ;;  %s507_s27 = sshll.u32 %s503_s29, 4  ;;  %s506_s13 = int_to_ptr.vmem [resolvable:$true] %s505_s13  ;;  %s508_s27 = int_to_ptr.hbm [resolvable:$true] %s507_s27 }
 0x238   : > { %s480_s24 = scalar_lea.sflag [#allocation5], %s1157_s20  ;;  %s944_s8 = sshra.s32 %s508_s27, 4  ;;  %s945_s8 = int_to_ptr.hbm [resolvable:$true] %s944_s8 }
 0x239   : > { %s946_s30 = scalar_lea.hbm %s945_s8, 2  ;;  %s950_s14 = scalar_lea.hbm %s1249_s4, 4 }
 0x23a   : > { %p947_p4 = scmp.ne.s32.totalorder %s945_s8, %s946_s30  ;;  %p951_p1 = scmp.lt.s32.totalorder %s945_s8, %s1249_s4 }
 0x23b   : > { %p952_p3 = scmp.lt.s32.totalorder %s950_s14, %s946_s30 }
 0x23c   : > { %p948_p7 = pnand %p947_p4, %p1137_p0 }
 0x23d   : > { %p953_p8 = por %p952_p3, %p951_p1 }
 0x23e   : > { %p949_p11 = pneg %p948_p7 }
 0x240   : > { %p954_p9 = pnand %p953_p8, %p949_p11 }
 0x2a2   : > { %v450_v43 = vpop.f32.mrf.mxu1 }
 0x2a3   : > { %v458_v44 = vadd.f32 %v807_v42, %v450_v43  ;;  %460 = vst [vmem:[#allocation1] sm:$0xff] %v450_v43 }
 0x2a5   : > { %vm466_vm11 = vcmp.le.f32.partialorder %v458_v44, 4.0 }
 0x2a6   : > { %vm467_vm12 = vmand %vm428_vm4, %vm466_vm11 }
 0x2a7   : > { %vm468_vm13 = vmpackc.low %vm467_vm12, %vm467_vm12 }
 0x2a8   : > { %v469_v47 = vsel %vm468_vm13, 16711935, %v1027_v46 }
 0x2a9   : > { %v471_v48 = vpack.c.b8 %v469_v47, %v469_v47 }
 0x2aa   : > { %v462_v49 = vld [vmem:[#allocation1 + $0x7] ss:$9 sm:$0xff]  ;;  %v452_v50 = vpop.f32.mrf.mxu1 }
 0x2ab   : > { %v464_v51 = vadd.f32 %v462_v49, %v454_v45  ;;  %vm472_vm14 = vnez %v471_v48 }
 0x2ac   : > { %v473_v52 = vsel %vm472_vm14, 16843009, %v1027_v46 }
 0x2ad   : > { %465 = vst [vmem:[#allocation2] sm:$0x1] %v464_v51 }
 0x2ae   : > { %475 = vst.msk [vmem:[%s324_s19] sm:$0x3] %vm474_vm15, %v473_v52 }
 0x2af   : > { %957 = shalt.err (!%p954_p9)
}
 0x2b0   : > { %724 = dma.vmem_to_hbm [thread:$0]  (%p1137_p0), %s506_s13, 32, %s508_s27, %s480_s24  }
 0x2b1 PF: > { %s537_s20 = sand.u32 1, %s1000_s21   ;;  %p740_p10 = pnand %p695_p6, %p1144_p5 }
 0x2b2   : > { %s538_s28 = scalar_lea.sflag [#allocation5], %s537_s20 }
 0x2b3   : > { %p741_p12 = pneg %p740_p10 }
 0x2b5   : > { %991 = dma.done.wait (%p741_p12), %s538_s28, 32  }
 0x2b6   : > { %993 = vsyncadd (%p741_p12), %s538_s28, 4294967264  ;;  %s558_s12 = scalar_lea.sflag [#allocation11], %s537_s20 }
 0x2b7   : > { %995 = dma.done.wait (%p741_p12), %s558_s12, 128  }
 0x2b8   : > { %997 = vsyncadd (%p741_p12), %s558_s12, 4294967168  ;;  %s27_s26 = sadd.s32 1, %s1020_s26   ;;  %s1261_s21 = smov %s1004_s22 }
 0x2b9   : > { %p24_p13 = scmp.ge.s32.totalorder %s27_s26, 4   ;;  %s1262_s22 = smov %s1008_s23 }
 0x2ba   : > { %s1263_s23 = smov %s1142_s9  ;;  %s1264_s24 = smov %s1016_s25 }
 0x2bb   : > { %s1265_s25 = smov %s1267_s18  ;;  %26 = sbr.rel (!%p24_p13) target bundleno = 12 (0xc), region = 123 }
 0x2c0   :  { %564 = vsyncpa [#allocation4], 1 }
 0x2c1   :  { %566 = vsyncpa [#allocation4 + $0x1], 1 }
 0x2c2   :  { %567 = vsyncpa [#allocation7], 1 }
 0x2c3   :  { %568 = vsyncpa [#allocation5], 1 }
 0x2c4   :  { %570 = vsyncpa [#allocation5 + $0x1], 1 }
 0x2c5   :  { %571 = vsyncpa [#allocation11], 1 }
 0x2c6   :  { %573 = vsyncpa [#allocation11 + $0x1], 1 }

</bundles_post_ra>
